<compile_context>
chip_gen: v7x
topology: tpu7x:2x2x1
jax: 0.10.0
libtpu: 0.0.40
codegen_flags: <defaults>
</compile_context>

<pallas_src>
import functools

import jax
import jax.numpy as jnp
from jax.experimental import pallas as pl
from jax.experimental.pallas import tpu as pltpu


def _policy_kernel(xT_ref, w1T_ref, b1_ref, w23T_ref, b23_ref, out_ref):
    xT = xT_ref[...]                                                  # (in_features, tb)

    # fc1 + ReLU, transposed: h1^T = w1^T @ x^T + b1  -> (hidden, tb), batch on lanes.
    h1 = jnp.dot(w1T_ref[...], xT, preferred_element_type=jnp.float32) + b1_ref[...]
    h1 = jnp.maximum(h1, 0.0)

    # Fused fc2+fc3: logits^T = (w2@w3)^T @ h1^T + (b2@w3 + b3)^T -> (num_actions, tb)
    logits = jnp.dot(w23T_ref[...], h1, preferred_element_type=jnp.float32) + b23_ref[...]

    # Numerically stable softmax over the action (sublane) axis: with num_actions=2
    # this is an elementwise max/add over two rows on the VPU.
    m = jnp.max(logits, axis=0, keepdims=True)
    e = jnp.exp(logits - m)
    denom = jnp.sum(e, axis=0, keepdims=True)
    # Reciprocal on the (otherwise idle) EUP slot; one Newton step restores full f32
    # accuracy so results match the divide-based reference tightly.
    inv = pl.reciprocal(denom, approx=True)
    inv = inv * (2.0 - denom * inv)
    out_ref[...] = (e * inv).astype(out_ref.dtype)


@functools.partial(jax.jit, static_argnames=("block_b",))
def policy_network_forward(x, fused, *, block_b=512):
    """x: (B, input_size) f32. fused: output of prepare_params (transposed, fc2/fc3 fused)."""
    B, in_features = x.shape
    hidden = fused["w1T"].shape[0]
    num_actions = fused["w23T"].shape[0]

    # Lane-dense layout: batch on the 128-lane axis.
    xT = x.T                                                          # (in_features, B)

    if B <= block_b:
        tb = B                      # one grid step: no pipeline overhead on v5e/v6e
    else:
        assert block_b % 128 == 0, "lane-axis tiles must be multiples of 128"
        tb = block_b                # partial last block is masked by Pallas (no pad)
    nb = pl.cdiv(B, tb)

    grid_spec = pltpu.PrefetchScalarGridSpec(
        num_scalar_prefetch=0,
        grid=(nb,),
        in_specs=[
            pl.BlockSpec((in_features, tb), lambda i: (0, i)),        # x^T: tiled over batch lanes
            pl.BlockSpec((hidden, in_features), lambda i: (0, 0)),    # w1^T: resident
            pl.BlockSpec((hidden, 1), lambda i: (0, 0)),              # b1 (column): resident
            pl.BlockSpec((num_actions, hidden), lambda i: (0, 0)),    # (w2@w3)^T: resident
            pl.BlockSpec((num_actions, 1), lambda i: (0, 0)),         # fused bias (column): resident
        ],
        out_specs=pl.BlockSpec((num_actions, tb), lambda i: (0, i)),
    )

    out_t = pl.pallas_call(
        _policy_kernel,
        out_shape=jax.ShapeDtypeStruct((num_actions, B), jnp.float32),
        grid_spec=grid_spec,
        compiler_params=pltpu.CompilerParams(
            dimension_semantics=("parallel",),  # batch tiles are independent
        ),
    )(xT, fused["w1T"], fused["b1"], fused["w23T"], fused["b23"])

    return out_t.T                                                    # (B, num_actions)


def prepare_params(params):
    """One-time (outside jit-forward) fc2/fc3 fusion + transpose to kernel layout."""
    hi = jax.lax.Precision.HIGHEST
    w23 = jnp.dot(params["w2"], params["w3"], precision=hi)           # (hidden, num_actions)
    b23 = jnp.dot(params["b2"], params["w3"], precision=hi) + params["b3"]  # (1, num_actions)
    return {
        "w1T": jnp.asarray(params["w1"].T),     # (hidden, input_size)
        "b1": jnp.asarray(params["b1"].T),      # (hidden, 1)
        "w23T": jnp.asarray(w23.T),             # (num_actions, hidden)
        "b23": jnp.asarray(b23.T),              # (num_actions, 1)
    }


def init_params(key, input_size, hidden_size, num_actions=2):
    """Deterministic synthetic init (PyTorch-Linear-style uniform fan-in bounds).

    Stored as (in_features, out_features) so y = x @ W + b matches the reference."""
    ks = jax.random.split(key, 6)

    def uniform(k, shape, fan_in):
        bound = 1.0 / jnp.sqrt(fan_in)
        return jax.random.uniform(k, shape, jnp.float32, -bound, bound)

    return {
        "w1": uniform(ks[0], (input_size, hidden_size), input_size),
        "b1": uniform(ks[1], (1, hidden_size), input_size),
        "w2": uniform(ks[2], (hidden_size, hidden_size), hidden_size),
        "b2": uniform(ks[3], (1, hidden_size), hidden_size),
        "w3": uniform(ks[4], (hidden_size, num_actions), hidden_size),
        "b3": uniform(ks[5], (1, num_actions), hidden_size),
    }


def reference_forward(x, p):
    """Unfused pure-JAX reference matching the PyTorch forward exactly."""
    h1 = jnp.maximum(x @ p["w1"] + p["b1"], 0.0)
    h2 = h1 @ p["w2"] + p["b2"]
    logits = h2 @ p["w3"] + p["b3"]
    return jax.nn.softmax(logits, axis=1)


if __name__ == "__main__":
    input_size, hidden_size, num_actions = 4, 32, 2
    batch = 2

    key = jax.random.PRNGKey(0)
    k_x, k_p = jax.random.split(key)
    x = jax.random.normal(k_x, (batch, input_size), jnp.float32)
    params = init_params(k_p, input_size, hidden_size, num_actions)
    fused = prepare_params(params)   # one-time fusion/transpose, not re-run per forward

    probs = jax.block_until_ready(policy_network_forward(x, fused))
    ref = reference_forward(x, params)
    assert probs.shape == (batch, num_actions)
    assert jnp.allclose(probs, ref, atol=5e-5, rtol=5e-5)
    assert jnp.allclose(jnp.sum(probs, axis=1), 1.0, atol=5e-5)

    # Multi-tile path: 3 lane-tiles of 128 over batch=300; last block is partial and
    # handled by Pallas masking (no wrapper pad / slice).
    xb = jax.random.normal(jax.random.PRNGKey(1), (300, input_size), jnp.float32)
    probs_b = jax.block_until_ready(policy_network_forward(xb, fused, block_b=128))
    ref_b = reference_forward(xb, params)
    assert probs_b.shape == (300, num_actions)
    assert jnp.allclose(probs_b, ref_b, atol=5e-5, rtol=5e-5)

    print("KERNEL_OK")
</pallas_src>

<mosaic_0001>
module attributes {stable_mosaic.version = 11 : i64} {
  func.func @_policy_kernel(%arg0: i32, %arg1: memref<4x2xf32, #tpu.memory_space<vmem>>, %arg2: memref<32x4xf32, #tpu.memory_space<vmem>>, %arg3: memref<32x1xf32, #tpu.memory_space<vmem>>, %arg4: memref<2x32xf32, #tpu.memory_space<vmem>>, %arg5: memref<2x1xf32, #tpu.memory_space<vmem>>, %arg6: memref<2x2xf32, #tpu.memory_space<vmem>>) attributes {dimension_semantics = [#tpu.dimension_semantics<parallel>], iteration_bounds = array<i64: 1>, scalar_prefetch = 0 : i64, scratch_operands = 0 : i64, tpu.core_type = #tpu.core_type<tc>, window_params = [{transform_indices = @transform_0, window_bounds = array<i64: 4, 2>}, {pipeline_mode = #tpu.pipeline_mode<synchronous>, transform_indices = @transform_1, window_bounds = array<i64: 32, 4>}, {pipeline_mode = #tpu.pipeline_mode<synchronous>, transform_indices = @transform_2, window_bounds = array<i64: 32, 1>}, {pipeline_mode = #tpu.pipeline_mode<synchronous>, transform_indices = @transform_3, window_bounds = array<i64: 2, 32>}, {pipeline_mode = #tpu.pipeline_mode<synchronous>, transform_indices = @transform_4, window_bounds = array<i64: 2, 1>}, {transform_indices = @transform_5, window_bounds = array<i64: 2, 2>}]} {
    %c0 = arith.constant 0 : index
    %c0_0 = arith.constant 0 : index
    %0 = vector.load %arg1[%c0, %c0_0] : memref<4x2xf32, #tpu.memory_space<vmem>>, vector<4x2xf32>
    %c0_1 = arith.constant 0 : index
    %c0_2 = arith.constant 0 : index
    %1 = vector.load %arg2[%c0_1, %c0_2] : memref<32x4xf32, #tpu.memory_space<vmem>>, vector<32x4xf32>
    %cst = arith.constant dense<0.000000e+00> : vector<32x2xf32>
    %2 = tpu.matmul %1, %0, %cst {dimension_numbers = #tpu.dot_dimension_numbers<[1], [0], [0], [1], [0, 0, 1, 1], [], []>} : vector<32x4xf32>, vector<4x2xf32>, vector<32x2xf32> -> vector<32x2xf32>
    %c0_3 = arith.constant 0 : index
    %c0_4 = arith.constant 0 : index
    %3 = vector.load %arg3[%c0_3, %c0_4] : memref<32x1xf32, #tpu.memory_space<vmem>>, vector<32x1xf32>
    %4 = vector.broadcast %3 : vector<32x1xf32> to vector<32x2xf32>
    %5 = arith.addf %2, %4 : vector<32x2xf32>
    %cst_5 = arith.constant 0.000000e+00 : f32
    %6 = vector.broadcast %cst_5 : f32 to vector<32x2xf32>
    %7 = arith.maximumf %5, %6 : vector<32x2xf32>
    %c0_6 = arith.constant 0 : index
    %c0_7 = arith.constant 0 : index
    %8 = vector.load %arg4[%c0_6, %c0_7] : memref<2x32xf32, #tpu.memory_space<vmem>>, vector<2x32xf32>
    %cst_8 = arith.constant dense<0.000000e+00> : vector<2x2xf32>
    %9 = tpu.matmul %8, %7, %cst_8 {dimension_numbers = #tpu.dot_dimension_numbers<[1], [0], [0], [1], [0, 0, 1, 1], [], []>} : vector<2x32xf32>, vector<32x2xf32>, vector<2x2xf32> -> vector<2x2xf32>
    %c0_9 = arith.constant 0 : index
    %c0_10 = arith.constant 0 : index
    %10 = vector.load %arg5[%c0_9, %c0_10] : memref<2x1xf32, #tpu.memory_space<vmem>>, vector<2x1xf32>
    %11 = vector.broadcast %10 : vector<2x1xf32> to vector<2x2xf32>
    %12 = arith.addf %9, %11 : vector<2x2xf32>
    %cst_11 = arith.constant dense<0xFF800000> : vector<2xf32>
    %13 = vector.multi_reduction <maximumf>, %12, %cst_11 [0] : vector<2x2xf32> to vector<2xf32>
    %14 = vector.shape_cast %13 : vector<2xf32> to vector<1x2xf32>
    %15 = vector.broadcast %14 : vector<1x2xf32> to vector<2x2xf32>
    %16 = arith.subf %12, %15 : vector<2x2xf32>
    %17 = math.exp %16 : vector<2x2xf32>
    %cst_12 = arith.constant dense<0.000000e+00> : vector<2xf32>
    %18 = vector.multi_reduction <add>, %17, %cst_12 [0] : vector<2x2xf32> to vector<2xf32>
    %19 = vector.shape_cast %18 : vector<2xf32> to vector<1x2xf32>
    %20 = tpu.reciprocal %19 {approx = true} : vector<1x2xf32> -> vector<1x2xf32>
    %21 = arith.mulf %19, %20 : vector<1x2xf32>
    %cst_13 = arith.constant 2.000000e+00 : f32
    %22 = vector.broadcast %cst_13 : f32 to vector<1x2xf32>
    %23 = arith.subf %22, %21 : vector<1x2xf32>
    %24 = arith.mulf %20, %23 : vector<1x2xf32>
    %25 = vector.broadcast %24 : vector<1x2xf32> to vector<2x2xf32>
    %26 = arith.mulf %17, %25 : vector<2x2xf32>
    %c0_14 = arith.constant 0 : index
    %c0_15 = arith.constant 0 : index
    %27 = vector.load %arg6[%c0_14, %c0_15] : memref<2x2xf32, #tpu.memory_space<vmem>>, vector<2x2xf32>
    tpu.vector_store %arg6[%c0_14, %c0_15], %26 {strides = array<i32>} : memref<2x2xf32, #tpu.memory_space<vmem>>, vector<2x2xf32>,
    return
  }
  func.func @transform_0(%arg0: i32) -> (i32, i32) {
    %c0_i32 = arith.constant 0 : i32
    %c0_i32_0 = arith.constant 0 : i32
    return %c0_i32, %arg0 : i32, i32
  }
  func.func @transform_1(%arg0: i32) -> (i32, i32) {
    %c0_i32 = arith.constant 0 : i32
    %c0_i32_0 = arith.constant 0 : i32
    %c0_i32_1 = arith.constant 0 : i32
    return %c0_i32, %c0_i32_0 : i32, i32
  }
  func.func @transform_2(%arg0: i32) -> (i32, i32) {
    %c0_i32 = arith.constant 0 : i32
    %c0_i32_0 = arith.constant 0 : i32
    %c0_i32_1 = arith.constant 0 : i32
    return %c0_i32, %c0_i32_0 : i32, i32
  }
  func.func @transform_3(%arg0: i32) -> (i32, i32) {
    %c0_i32 = arith.constant 0 : i32
    %c0_i32_0 = arith.constant 0 : i32
    %c0_i32_1 = arith.constant 0 : i32
    return %c0_i32, %c0_i32_0 : i32, i32
  }
  func.func @transform_4(%arg0: i32) -> (i32, i32) {
    %c0_i32 = arith.constant 0 : i32
    %c0_i32_0 = arith.constant 0 : i32
    %c0_i32_1 = arith.constant 0 : i32
    return %c0_i32, %c0_i32_0 : i32, i32
  }
  func.func @transform_5(%arg0: i32) -> (i32, i32) {
    %c0_i32 = arith.constant 0 : i32
    %c0_i32_0 = arith.constant 0 : i32
    return %c0_i32, %arg0 : i32, i32
  }
}

</mosaic_0001>

<bundles_post_ra>
// kernel: policy_network_forward.1
= control target key start
LH: loop header
LB: loop body
LE: loop exit
PB: predicated region body
PF: predicated region fallthrough
CT: control target
= control target key end

     0   :  { %vm62_vm0 = vcmask 1043456   ;;  %vm49_vm1 = vcmask 31744   ;;  %v315_v3 = vmov 0   ;;  %v316_v11 = vmov 0.0|0.0   ;;  %s392_s0 = inlined_call_operand.vmem [shape: f32[4,2], index: 0, kind: input, shape index: {}]   ;;  %s393_s1 = inlined_call_operand.vmem [shape: f32[32,4], index: 1, kind: input, shape index: {}]   ;;  %s394_s2 = inlined_call_operand.vmem [shape: f32[32,1], index: 2, kind: input, shape index: {}]   ;;  %s395_s4 = inlined_call_operand.vmem [shape: f32[2,1], index: 4, kind: input, shape index: {}]   ;;  %s396_s3 = inlined_call_operand.vmem [shape: f32[2,32], index: 3, kind: input, shape index: {}]   ;;  %s397_s5 = inlined_call_operand.vmem [shape: f32[2,2], index: 5, kind: output, shape index: {}]  }
   0x1   :  { %v20_v0 = vld [vmem:[%s392_s0] sm:$0xf]  ;;  %v22_v2 = vld [vmem:[%s393_s1 + $0x8] sm:$0xff]  ;;  %309 = vset.pattern.permute.xlu0 %v315_v3  ;;  %310 = vset.pattern.permute.xlu1 %v315_v3  ;;  %v23_v4 = vld [vmem:[%s393_s1 + $0x10] sm:$0xff]  ;;  %vm317_vm2 = vmmov 0   ;;  %v318_v12 = vmov 0.0  }
   0x2   :  { %v21_v1 = vld [vmem:[%s393_s1] sm:$0xff]  ;;  %280 = vmatprep.subr.msk.mxu0 %vm62_vm0, %v20_v0  ;;  %v27_v6 = vld [vmem:[%s394_s2 + $0x10] sm:$0xff]  ;;  %v26_v7 = vld [vmem:[%s394_s2 + $0x8] sm:$0xff]  ;;  %299 = vmatprep.subr.bf16.mxu1 %v316_v11  ;;  %vm162_vm3 = vcmask 261120   ;;  %vm236_vm4 = vcmask 9216  }
   0x3   :  { %282 = vmatprep.mubr.msk.f32.mxu0 %vm49_vm1, %v21_v1  ;;  %v25_v5 = vld [vmem:[%s394_s2] sm:$0xff]  ;;  %281 = vmatpush3.msk.msra.mxu0 %vm62_vm0, %v20_v0  ;;  %v24_v8 = vld [vmem:[%s393_s1 + $0x18] sm:$0xff] }
   0x4   :  { %31 = vperm.xlu0 %309, %v25_v5   ;;  %283 = vmatmul.mubr.msk.f32.vlgmr.msra.gmra.mrb[0].mxu0 %vm49_vm1, %v22_v2  ;;  %v28_v9 = vld [vmem:[%s394_s2 + $0x18] sm:$0xff]  ;;  %v156_v10 = vld [vmem:[%s395_s4] sm:$0x3] }
   0x5   :  { %41 = vperm.xlu1 %310, %v27_v6   ;;  %285 = vmatprep.mubr.msk.f32.mxu0 %vm49_vm1, %v23_v4  ;;  %v155_v31 = vld [vmem:[%s396_s3] sm:$0x3] }
   0x6   :  { %296 = vmatprep.mubr.msk.f32.mxu1 %vm317_vm2, %v318_v12 }
   0x8   :  { %36 = vperm.xlu0 %309, %v26_v7   ;;  %286 = vmatmul.mubr.msk.f32.gmra.mrb[2].mxu0 %vm49_vm1, %v24_v8 }
   0x9   :  { %46 = vperm.xlu1 %310, %v28_v9  }
   0xc   :  { %159 = vperm.xlu0 %309, %v156_v10  }
  0x83   :  { %v32_v13 = vpop.permute.xlu0 %31 }
  0x84   :  { %v42_v14 = vpop.permute.xlu1 %41 }
  0x87   :  { %v37_v15 = vpop.permute.xlu0 %36 }
  0x88   :  { %v47_v21 = vpop.permute.xlu1 %46 }
  0x8b   :  { %v160_v32 = vpop.permute.xlu0 %159 }
  0xd7   :  { %v284_v16 = vpop.f32.mrb[0].mxu0 }
  0xd8   :  { %v138_v17 = vadd.f32 %v284_v16, %v37_v15  ;;  %v132_v18 = vpop.f32.mrb[1].mxu0 }
  0xd9   :  { %v133_v19 = vadd.f32 %v132_v18, %v32_v13 }
  0xda   :  { %v152_v20 = vmax.f32 %v138_v17, 0.0 }
  0xdb   :  { %v151_v22 = vmax.f32 %v133_v19, 0.0  ;;  %v287_v23 = vpop.f32.mrb[2].mxu0 }
  0xdc   :  { %v148_v24 = vadd.f32 %v287_v23, %v47_v21  ;;  %v142_v25 = vpop.f32.mrb[3].mxu0 }
  0xdd   :  { %v143_v26 = vadd.f32 %v142_v25, %v42_v14  ;;  %v300_v27 = vpack.c.bf16 %v152_v20, %v151_v22 }
  0xde   :  { %v154_v28 = vmax.f32 %v148_v24, 0.0 }
  0xdf   :  { %v153_v29 = vmax.f32 %v143_v26, 0.0  ;;  %301 = vmatpush3.bf16.msra.mxu1 %v300_v27 }
  0xe0   :  { %302 = vmatprep.subr.bf16.mxu1 %v316_v11 }
  0xe1   :  { %v303_v30 = vpack.c.bf16 %v154_v28, %v153_v29 }
  0xe3   :  { %304 = vmatpush3.bf16.msra.mxu1 %v303_v30 }
  0xe6   :  { %297 = vmatmul.mubr.msk.f32.vlgmr.msra.gmra.mrb[0].mxu1 %vm162_vm3, %v155_v31 }
 0x1b9   :  { %v232_v33 = vpop.f32.mrb[0].mxu1 }
 0x1ba   :  { %v233_v34 = vadd.f32 %v232_v33, %v160_v32  ;;  %v298_v35 = vpop.f32.mrb[1].mxu1 }
 0x1bc   :  { %v237_v36 = vsel %vm236_vm4, %v233_v34, -inf }
 0x1bd   :  { %v238_v37 = vrot.slane %v237_v36, 4 }
 0x1bf   :  { %v239_v38 = vmax.f32 %v237_v36, %v238_v37 }
 0x1c1   :  { %v240_v39 = vrot.slane %v239_v38, 2 }
 0x1c3   :  { %v241_v40 = vmax.f32 %v239_v38, %v240_v39 }
 0x1c5   :  { %v242_v41 = vrot.slane %v241_v40, 1 }
 0x1c7   :  { %v243_v42 = vmax.f32 %v241_v40, %v242_v41 }
 0x1c9   :  { %v244_v43 = vsub.f32 %v233_v34, %v243_v42 }
 0x1cb   :  { %v245_v44 = vmul.f32 1.442695, %v244_v43 }
 0x1cd   :  { %311 = vpow2.f32 %v245_v44 }
 0x1d7   :  { %v312_v45 = vpop.eup %311 }
 0x1d8   :  { %v247_v46 = vsel %vm236_vm4, %v312_v45, 0.0 }
 0x1d9   :  { %v248_v47 = vrot.slane %v247_v46, 4 }
 0x1db   :  { %v249_v48 = vadd.f32 %v248_v47, %v247_v46 }
 0x1dd   :  { %v250_v49 = vrot.slane %v249_v48, 2 }
 0x1df   :  { %v251_v50 = vadd.f32 %v250_v49, %v249_v48 }
 0x1e1   :  { %v252_v51 = vrot.slane %v251_v50, 1 }
 0x1e3   :  { %v253_v52 = vadd.f32 %v252_v51, %v251_v50 }
 0x1e5   :  { %313 = vrcp.f32 %v253_v52 }
 0x1ef   :  { %v314_v53 = vpop.eup %313 }
 0x1f0   :  { %v255_v54 = vmul.f32 %v314_v53, %v253_v52 }
 0x1f2   :  { %v256_v55 = vsub.f32 2.0, %v255_v54 }
 0x1f4   :  { %v257_v56 = vmul.f32 %v314_v53, %v256_v55 }
 0x1f6   :  { %v258_v57 = vmul.f32 %v312_v45, %v257_v56 }
 0x1f8   :  { %259 = vst.msk [vmem:[%s397_s5] sm:$0x3] %vm236_vm4, %v258_v57 }

</bundles_post_ra>
